<compile_context>
chip_gen: v5e
topology: v5e:2x2
jax: 0.10.0
libtpu: 0.0.40
codegen_flags: <defaults>
</compile_context>

<pallas_src>
import jax
import jax.numpy as jnp
from jax.experimental import pallas as pl
from jax.experimental.pallas import tpu as pltpu


# ---------------------------------------------------------------------------
# Stage 1: neighbor projection  Z = x_src @ W_neigh   (tile-invariant, done once)
# ---------------------------------------------------------------------------
def _project_kernel(x_ref, w_ref, z_ref):
    z_ref[...] = jnp.dot(
        x_ref[...], w_ref[...], preferred_element_type=jnp.float32
    ).astype(z_ref.dtype)


def neighbor_projection(x, w_neigh, *, tile_rows=256):
    num_src, in_feats = x.shape
    n_classes = w_neigh.shape[1]
    tile_rows = min(tile_rows, num_src)
    assert num_src % tile_rows == 0

    cost = pl.CostEstimate(
        flops=2 * num_src * in_feats * n_classes,
        transcendentals=0,
        bytes_accessed=4 * (num_src * in_feats
                            + in_feats * n_classes
                            + num_src * n_classes),
    )

    return pl.pallas_call(
        _project_kernel,
        out_shape=jax.ShapeDtypeStruct((num_src, n_classes), jnp.float32),
        grid_spec=pltpu.PrefetchScalarGridSpec(
            num_scalar_prefetch=0,
            grid=(num_src // tile_rows,),
            in_specs=[
                pl.BlockSpec((tile_rows, in_feats), lambda i: (i, 0)),
                pl.BlockSpec((in_feats, n_classes), lambda i: (0, 0)),
            ],
            out_specs=pl.BlockSpec((tile_rows, n_classes), lambda i: (i, 0)),
        ),
        compiler_params=pltpu.CompilerParams(
            dimension_semantics=("parallel",)),
        cost_estimate=cost,
    )(x, w_neigh)


# ---------------------------------------------------------------------------
# Stage 2: fused aggregation + self projection + bias + ReLU, K-tiled over src.
# ---------------------------------------------------------------------------
def _sage_kernel(adj_ref, z_ref, xdst_ref, ws_ref, b_ref, o_ref, acc_ref):
    k = pl.program_id(1)

    @pl.when(k == 0)
    def _():
        # Fold the self projection and bias into the accumulator once per dst tile.
        acc_ref[...] = (
            jnp.dot(xdst_ref[...], ws_ref[...], preferred_element_type=jnp.float32)
            + b_ref[...]
        )

    # Mean-aggregated neighbor contribution for this src (K) tile:
    # (tile_dst, tile_src) @ (tile_src, n_classes) — contracts over n_classes-
    # projected features, not in_feats.
    acc_ref[...] += jnp.dot(
        adj_ref[...], z_ref[...], preferred_element_type=jnp.float32
    )

    @pl.when(k == pl.num_programs(1) - 1)
    def _():
        o_ref[...] = jnp.maximum(acc_ref[...], 0.0).astype(o_ref.dtype)


def sage_one_layer(adj_norm, x, num_dst, w_neigh, w_self, bias, *,
                   tile_dst=128, tile_src=256):
    """adj_norm: (num_dst, num_src) mean-normalized dense block adjacency.
       x:        (num_src, in_feats) node features; dst nodes are the FIRST
                 num_dst rows of x (DGL block convention).
       w_neigh, w_self: (in_feats, n_classes) pre-transposed weights.
       bias:     (1, n_classes)."""
    num_src, in_feats = x.shape
    n_classes = w_neigh.shape[1]
    assert adj_norm.shape == (num_dst, num_src)
    assert num_dst <= num_src, "dst nodes must be the first rows of x"

    tile_dst = min(tile_dst, num_dst)
    tile_src = min(tile_src, num_src)
    assert num_dst % tile_dst == 0 and num_src % tile_src == 0

    # Stage 1 (once): project all src features with W_neigh.
    z = neighbor_projection(x, w_neigh, tile_rows=tile_src)

    grid = (num_dst // tile_dst, num_src // tile_src)

    cost = pl.CostEstimate(
        flops=2 * num_dst * num_src * n_classes
              + 2 * num_dst * in_feats * n_classes,
        transcendentals=0,
        bytes_accessed=4 * (num_dst * num_src
                            + num_src * n_classes
                            + num_dst * in_feats
                            + in_feats * n_classes
                            + n_classes
                            + num_dst * n_classes),
    )

    return pl.pallas_call(
        _sage_kernel,
        out_shape=jax.ShapeDtypeStruct((num_dst, n_classes), x.dtype),
        grid_spec=pltpu.PrefetchScalarGridSpec(
            num_scalar_prefetch=0,
            grid=grid,
            in_specs=[
                pl.BlockSpec((tile_dst, tile_src), lambda i, k: (i, k)),    # adj tile
                pl.BlockSpec((tile_src, n_classes), lambda i, k: (k, 0)),   # Z tile
                pl.BlockSpec((tile_dst, in_feats), lambda i, k: (i, 0)),    # x_dst tile (view on x)
                pl.BlockSpec((in_feats, n_classes), lambda i, k: (0, 0)),   # W_self
                pl.BlockSpec((1, n_classes), lambda i, k: (0, 0)),          # bias
            ],
            out_specs=pl.BlockSpec((tile_dst, n_classes), lambda i, k: (i, 0)),
            scratch_shapes=[pltpu.VMEM((tile_dst, n_classes), jnp.float32)],
        ),
        compiler_params=pltpu.CompilerParams(
            dimension_semantics=("parallel", "arbitrary")),
        cost_estimate=cost,
    )(adj_norm, z, x, w_self, bias)


def reference(adj_norm, x, num_dst, w_neigh, w_self, bias):
    x_dst = x[:num_dst]
    h_neigh = adj_norm @ x
    return jnp.maximum(x_dst @ w_self + h_neigh @ w_neigh + bias, 0.0)


if __name__ == "__main__":
    key = jax.random.PRNGKey(0)
    k_x, k_e, k_wn, k_ws, k_b = jax.random.split(key, 5)

    # Bipartite block: 512 src nodes -> 256 dst nodes (dst = first 256 rows of x).
    num_src, num_dst = 512, 256
    in_feats, n_classes = 128, 32

    x = jax.random.normal(k_x, (num_src, in_feats), dtype=jnp.float32)

    # Deterministic random bipartite graph -> dense mean-normalized adjacency.
    edge_mask = (jax.random.uniform(k_e, (num_dst, num_src)) < 0.05).astype(jnp.float32)
    deg = edge_mask.sum(axis=1, keepdims=True)
    adj_norm = edge_mask / jnp.maximum(deg, 1.0)   # isolated dst nodes aggregate 0

    # SAGEConv parameters (fc_neigh: no bias, fc_self: bias), stored pre-transposed.
    w_neigh = jax.random.normal(k_wn, (in_feats, n_classes), dtype=jnp.float32) * 0.1
    w_self = jax.random.normal(k_ws, (in_feats, n_classes), dtype=jnp.float32) * 0.1
    bias = jax.random.normal(k_b, (1, n_classes), dtype=jnp.float32) * 0.1

    out = sage_one_layer(adj_norm, x, num_dst, w_neigh, w_self, bias)
    out = jax.block_until_ready(out)

    ref = reference(adj_norm, x, num_dst, w_neigh, w_self, bias)
    assert out.shape == (num_dst, n_classes)
    assert jnp.allclose(out, ref, atol=1e-4, rtol=1e-4)

    print("KERNEL_OK")
</pallas_src>

<mosaic_0001>
module attributes {stable_mosaic.version = 11 : i64} {
  func.func @_project_kernel(%arg0: i32, %arg1: memref<256x128xf32, #tpu.memory_space<vmem>>, %arg2: memref<128x32xf32, #tpu.memory_space<vmem>>, %arg3: memref<256x32xf32, #tpu.memory_space<vmem>>) attributes {dimension_semantics = [#tpu.dimension_semantics<parallel>], iteration_bounds = array<i64: 2>, scalar_prefetch = 0 : i64, scratch_operands = 0 : i64, tpu.core_type = #tpu.core_type<tc>, window_params = [{transform_indices = @transform_0, window_bounds = array<i64: 256, 128>}, {pipeline_mode = #tpu.pipeline_mode<synchronous>, transform_indices = @transform_1, window_bounds = array<i64: 128, 32>}, {transform_indices = @transform_2, window_bounds = array<i64: 256, 32>}]} {
    %c0 = arith.constant 0 : index
    %c0_0 = arith.constant 0 : index
    %0 = vector.load %arg1[%c0, %c0_0] : memref<256x128xf32, #tpu.memory_space<vmem>>, vector<256x128xf32>
    %c0_1 = arith.constant 0 : index
    %c0_2 = arith.constant 0 : index
    %1 = vector.load %arg2[%c0_1, %c0_2] : memref<128x32xf32, #tpu.memory_space<vmem>>, vector<128x32xf32>
    %cst = arith.constant dense<0.000000e+00> : vector<256x32xf32>
    %2 = tpu.matmul %0, %1, %cst {dimension_numbers = #tpu.dot_dimension_numbers<[1], [0], [0], [1], [0, 0, 1, 1], [], []>} : vector<256x128xf32>, vector<128x32xf32>, vector<256x32xf32> -> vector<256x32xf32>
    %c0_3 = arith.constant 0 : index
    %c0_4 = arith.constant 0 : index
    %3 = vector.load %arg3[%c0_3, %c0_4] : memref<256x32xf32, #tpu.memory_space<vmem>>, vector<256x32xf32>
    tpu.vector_store %arg3[%c0_3, %c0_4], %2 {strides = array<i32>} : memref<256x32xf32, #tpu.memory_space<vmem>>, vector<256x32xf32>,
    return
  }
  func.func @transform_0(%arg0: i32) -> (i32, i32) {
    %c0_i32 = arith.constant 0 : i32
    %c0_i32_0 = arith.constant 0 : i32
    return %arg0, %c0_i32 : i32, i32
  }
  func.func @transform_1(%arg0: i32) -> (i32, i32) {
    %c0_i32 = arith.constant 0 : i32
    %c0_i32_0 = arith.constant 0 : i32
    %c0_i32_1 = arith.constant 0 : i32
    return %c0_i32, %c0_i32_0 : i32, i32
  }
  func.func @transform_2(%arg0: i32) -> (i32, i32) {
    %c0_i32 = arith.constant 0 : i32
    %c0_i32_0 = arith.constant 0 : i32
    return %arg0, %c0_i32 : i32, i32
  }
}

</mosaic_0001>

<bundles_post_ra>
// kernel: tpu_custom_call.1
= control target key start
LH: loop header
LB: loop body
LE: loop exit
PB: predicated region body
PF: predicated region fallthrough
CT: control target
= control target key end

     0   :  { %7 = vsyncpa [#allocation3], 0  ;;  %s854_s0 = inlined_call_operand.hbm [shape: f32[512,128], index: 0, kind: input, shape index: {}]   ;;  %s855_s1 = inlined_call_operand.vmem [shape: f32[128,32], index: 1, kind: input, shape index: {}]   ;;  %s856_s2 = inlined_call_operand.vmem [shape: f32[512,32], index: 2, kind: output, shape index: {}]  }
   0x1   :  { %9 = vsyncpa [#allocation3 + $0x1], 0  ;;  %s615_s9 = smov 0   ;;  %s617_s10 = smov 0  }
   0x2   :  { %s619_s11 = smov 0   ;;  %s621_s12 = smov 0  }
   0x3 LB: > { %s429_s13 = sadd.s32 4294967295, %s596_s12   ;;  %s635_s14 = sadd.s32 1, %s596_s12   ;;  %s596_s12 = sphi %s621_s12, %s863_s12   ;;  %s592_s11 = sphi %s619_s11, %s862_s11   ;;  %s588_s10 = sphi %s617_s10, %s861_s10   ;;  %s584_s9 = sphi %s615_s9, %s860_s9  }
   0x4   : > { %s19_s15 = ssub.s32 %s596_s12, %s635_s14  ;;  %s22_s16 = sadd.s32 1, %s592_s11 }
   0x5   : > { %p20_p0 = scmp.eq.s32.totalorder %s19_s15, 0  ;;  %p29_p1 = scmp.ne.s32.totalorder %s592_s11, %s588_s10 }
   0x6   : > { %p30_p2 = scmp.eq.s32.totalorder %s596_s12, 0  ;;  %p35_p3 = scmp.ne.s32.totalorder %s588_s10, %s584_s9 }
   0x7   : > { %s645_s17 = scalar_select %p20_p0, %s592_s11, %s22_s16  }
   0x8   : > { %p647_p4 = por %p30_p2, %p29_p1  ;;  %p36_p5 = scmp.eq.s32.totalorder %s429_s13, 0 }
   0x9   : > { %p497_p6 = scmp.lt.s32.totalorder %s596_s12, 2  ;;  %s109_s20 = sand.u32 1, %s592_s11  }
   0xa   : > { %p654_p7 = por %p36_p5, %p35_p3  ;;  %s433_s21 = sshll.u32 %s109_s20, 8 }
   0xb   : > { %s442_s22 = sshll.u32 %s596_s12, 8  ;;  %s113_s26 = scalar_lea.vmem [#allocation2], %s433_s21 }
   0xc   : > { %s118_s25 = scalar_lea.hbm %s854_s0, %s442_s22  ;;  %s121_s27 = sshll.u32 %s113_s26, 4  ;;  %s122_s27 = int_to_ptr.vmem [resolvable:$true] %s121_s27 }
   0xd   : > { %s119_s28 = sshll.u32 %s118_s25, 4  ;;  %p665_p8 = pnand %p497_p6, %p647_p4  ;;  %s120_s28 = int_to_ptr.hbm [resolvable:$true] %s119_s28 }
   0xe   : > { %p436_p9 = scmp.ge.s32.totalorder %s596_s12, 1  ;;  %s110_s30 = scalar_lea.sflag [#allocation3], %s109_s20 }
   0xf   : > { %s532_s3 = sshra.s32 %s120_s28, 4  ;;  %p536_p11 = pneg %p665_p8  ;;  %s533_s3 = int_to_ptr.hbm [resolvable:$true] %s532_s3 }
  0x10   : > { %s534_s4 = scalar_lea.hbm %s533_s3, 256  ;;  %s539_s7 = scalar_lea.hbm %s854_s0, 512 }
  0x11   : > { %p535_p10 = scmp.ne.s32.totalorder %s533_s3, %s534_s4  ;;  %p540_p0 = scmp.lt.s32.totalorder %s533_s3, %s854_s0 }
  0x12   : > { %p541_p1 = scmp.lt.s32.totalorder %s539_s7, %s534_s4 }
  0x13   : > { %p537_p12 = pnand %p536_p11, %p535_p10 }
  0x14   : > { %p542_p2 = por %p541_p1, %p540_p0 }
  0x15   : > { %p538_p13 = pneg %p537_p12 }
  0x17   : > { %p543_p3 = pnand %p542_p2, %p538_p13 }
  0x19   : > { %546 = shalt.err (!%p543_p3)
}
  0x1a   : > { %s598_s15 = smov 128   ;;  %s599_s16 = smov 8  }
  0x1b   : > { %496 = dma.hbm_to_vmem [thread:$0]  (!%p665_p8), %s120_s28, 4096, %s122_s27, %s110_s30, %s598_s15, %s598_s15, %s599_s16  }
  0x1c   : > { %p129_p4 = scmp.lt.s32.totalorder %s596_s12, 3 }
  0x1e   : > { %p130_p5 = pnand %p436_p9, %p129_p4 }
  0x1f   : > { %s135_s18 = sand.u32 (!%p130_p5), 1, %s588_s10  }
  0x20   : > { %133 = sbr.rel (%p130_p5) target bundleno = 260 (0x104), region = 28  ;;  %s437_s20 = sshll.u32 (!%p130_p5), %s135_s18, 8 }
  0x21   : > { %s136_s21 = scalar_lea.sflag (!%p130_p5), [#allocation3], %s135_s18  ;;  %s684_s22 = scalar_lea.vmem (!%p130_p5), [#allocation2], %s437_s20 }
  0x25   : > { %579 = dma.done.wait (%p654_p7), %s136_s21, 4096  }
  0x26   : > { %581 = vsyncadd (%p654_p7), %s136_s21, 4294963200  ;;  %v215_v0 = vld [vmem:[%s855_s1 + $0x78] sm:$0xff]  ;;  %v214_v1 = vld [vmem:[%s855_s1 + $0x70] sm:$0xff]  ;;  %s438_s5 = sshll.u32 %s429_s13, 5  ;;  %vm329_vm0 = vcmask 261120  }
  0x27   : > { %444 = vmatpush.msra.mxu2 %v215_v0  ;;  %445 = vmatpush.msra.mxu3 %v215_v0  ;;  %v213_v2 = vld [vmem:[%s855_s1 + $0x68] sm:$0xff]  ;;  %v212_v3 = vld [vmem:[%s855_s1 + $0x60] sm:$0xff]  ;;  %v211_v4 = vld [vmem:[%s855_s1 + $0x58] sm:$0xff]  ;;  %p163_p6 = scmp.lt.s32.totalorder %s438_s5, 63 }
  0x28   : > { %216 = vmatpush.msra.mxu0 %v215_v0  ;;  %443 = vmatpush.msra.mxu1 %v215_v0  ;;  %v210_v5 = vld [vmem:[%s855_s1 + $0x50] sm:$0xff]  ;;  %v209_v6 = vld [vmem:[%s855_s1 + $0x48] sm:$0xff]  ;;  %v208_v7 = vld [vmem:[%s855_s1 + $0x40] sm:$0xff] }
  0x29   : > { %447 = vmatpush.msra.mxu2 %v214_v1  ;;  %448 = vmatpush.msra.mxu3 %v214_v1  ;;  %v207_v8 = vld [vmem:[%s855_s1 + $0x38] sm:$0xff]  ;;  %v206_v9 = vld [vmem:[%s855_s1 + $0x30] sm:$0xff]  ;;  %v205_v10 = vld [vmem:[%s855_s1 + $0x28] sm:$0xff]  ;;  %s865_s5 = smov (!%p163_p6, %s438_s5), 63 }
  0x2a   : > { %217 = vmatpush.msra.mxu0 %v214_v1  ;;  %446 = vmatpush.msra.mxu1 %v214_v1  ;;  %v204_v11 = vld [vmem:[%s855_s1 + $0x20] sm:$0xff]  ;;  %v203_v12 = vld [vmem:[%s855_s1 + $0x18] sm:$0xff]  ;;  %v202_v13 = vld [vmem:[%s855_s1 + $0x10] sm:$0xff]  ;;  %s439_s6 = sshll.u32 %s865_s5, 3 }
  0x2b   : > { %450 = vmatpush.msra.mxu2 %v213_v2  ;;  %451 = vmatpush.msra.mxu3 %v213_v2  ;;  %v201_v14 = vld [vmem:[%s855_s1 + $0x8] sm:$0xff]  ;;  %v200_v15 = vld [vmem:[%s855_s1] sm:$0xff]  ;;  %v186_v24 = vld [vmem:[%s684_s22 + $0x90] sm:$0xff]  ;;  %s775_s9 = scalar_lea.vmem %s856_s2, %s439_s6 }
  0x2c   : > { %218 = vmatpush.msra.mxu0 %v213_v2  ;;  %449 = vmatpush.msra.mxu1 %v213_v2  ;;  %v184_v16 = vld [vmem:[%s684_s22 + $0x80] sm:$0xff]  ;;  %v185_v20 = vld [vmem:[%s684_s22 + $0x88] sm:$0xff]  ;;  %v194_v25 = vld [vmem:[%s684_s22 + $0xd0] sm:$0xff] }
  0x2d   : > { %453 = vmatpush.msra.mxu2 %v212_v3  ;;  %454 = vmatpush.msra.mxu3 %v212_v3  ;;  %v192_v17 = vld [vmem:[%s684_s22 + $0xc0] sm:$0xff]  ;;  %v193_v21 = vld [vmem:[%s684_s22 + $0xc8] sm:$0xff]  ;;  %v170_v26 = vld [vmem:[%s684_s22 + $0x10] sm:$0xff] }
  0x2e   : > { %219 = vmatpush.msra.mxu0 %v212_v3  ;;  %452 = vmatpush.msra.mxu1 %v212_v3  ;;  %v168_v18 = vld [vmem:[%s684_s22] sm:$0xff]  ;;  %v169_v22 = vld [vmem:[%s684_s22 + $0x8] sm:$0xff]  ;;  %v178_v27 = vld [vmem:[%s684_s22 + $0x50] sm:$0xff] }
  0x2f   : > { %456 = vmatpush.msra.mxu2 %v211_v4  ;;  %457 = vmatpush.msra.mxu3 %v211_v4  ;;  %v176_v19 = vld [vmem:[%s684_s22 + $0x40] sm:$0xff]  ;;  %v177_v23 = vld [vmem:[%s684_s22 + $0x48] sm:$0xff]  ;;  %v187_v28 = vld [vmem:[%s684_s22 + $0x98] sm:$0xff] }
  0x30   : > { %220 = vmatpush.msra.mxu0 %v211_v4  ;;  %455 = vmatpush.msra.mxu1 %v211_v4  ;;  %v195_v29 = vld [vmem:[%s684_s22 + $0xd8] sm:$0xff]  ;;  %v188_v32 = vld [vmem:[%s684_s22 + $0xa0] sm:$0xff]  ;;  %v189_v36 = vld [vmem:[%s684_s22 + $0xa8] sm:$0xff] }
  0x31   : > { %459 = vmatpush.msra.mxu2 %v210_v5  ;;  %460 = vmatpush.msra.mxu3 %v210_v5  ;;  %v171_v30 = vld [vmem:[%s684_s22 + $0x18] sm:$0xff]  ;;  %v196_v33 = vld [vmem:[%s684_s22 + $0xe0] sm:$0xff]  ;;  %v197_v37 = vld [vmem:[%s684_s22 + $0xe8] sm:$0xff] }
  0x32   : > { %221 = vmatpush.msra.mxu0 %v210_v5  ;;  %458 = vmatpush.msra.mxu1 %v210_v5  ;;  %v179_v31 = vld [vmem:[%s684_s22 + $0x58] sm:$0xff]  ;;  %v172_v34 = vld [vmem:[%s684_s22 + $0x20] sm:$0xff]  ;;  %v173_v38 = vld [vmem:[%s684_s22 + $0x28] sm:$0xff] }
  0x33   : > { %462 = vmatpush.msra.mxu2 %v209_v6  ;;  %463 = vmatpush.msra.mxu3 %v209_v6  ;;  %v180_v35 = vld [vmem:[%s684_s22 + $0x60] sm:$0xff]  ;;  %v181_v39 = vld [vmem:[%s684_s22 + $0x68] sm:$0xff]  ;;  %v190_v40 = vld [vmem:[%s684_s22 + $0xb0] sm:$0xff] }
  0x34   : > { %222 = vmatpush.msra.mxu0 %v209_v6  ;;  %461 = vmatpush.msra.mxu1 %v209_v6  ;;  %v198_v41 = vld [vmem:[%s684_s22 + $0xf0] sm:$0xff]  ;;  %v191_v44 = vld [vmem:[%s684_s22 + $0xb8] sm:$0xff] }
  0x35   : > { %465 = vmatpush.msra.mxu2 %v208_v7  ;;  %466 = vmatpush.msra.mxu3 %v208_v7  ;;  %v174_v42 = vld [vmem:[%s684_s22 + $0x30] sm:$0xff]  ;;  %v199_v45 = vld [vmem:[%s684_s22 + $0xf8] sm:$0xff] }
  0x36   : > { %223 = vmatpush.msra.mxu0 %v208_v7  ;;  %464 = vmatpush.msra.mxu1 %v208_v7  ;;  %v182_v43 = vld [vmem:[%s684_s22 + $0x70] sm:$0xff]  ;;  %v175_v46 = vld [vmem:[%s684_s22 + $0x38] sm:$0xff] }
  0x37   : > { %468 = vmatpush.msra.mxu2 %v207_v8  ;;  %469 = vmatpush.msra.mxu3 %v207_v8  ;;  %v183_v47 = vld [vmem:[%s684_s22 + $0x78] sm:$0xff] }
  0x38   : > { %224 = vmatpush.msra.mxu0 %v207_v8  ;;  %467 = vmatpush.msra.mxu1 %v207_v8 }
  0x39   : > { %471 = vmatpush.msra.mxu2 %v206_v9  ;;  %472 = vmatpush.msra.mxu3 %v206_v9 }
  0x3a   : > { %225 = vmatpush.msra.mxu0 %v206_v9  ;;  %470 = vmatpush.msra.mxu1 %v206_v9 }
  0x3b   : > { %474 = vmatpush.msra.mxu2 %v205_v10  ;;  %475 = vmatpush.msra.mxu3 %v205_v10 }
  0x3c   : > { %226 = vmatpush.msra.mxu0 %v205_v10  ;;  %473 = vmatpush.msra.mxu1 %v205_v10 }
  0x3d   : > { %477 = vmatpush.msra.mxu2 %v204_v11  ;;  %478 = vmatpush.msra.mxu3 %v204_v11 }
  0x3e   : > { %227 = vmatpush.msra.mxu0 %v204_v11  ;;  %476 = vmatpush.msra.mxu1 %v204_v11 }
  0x3f   : > { %480 = vmatpush.msra.mxu2 %v203_v12  ;;  %481 = vmatpush.msra.mxu3 %v203_v12 }
  0x40   : > { %228 = vmatpush.msra.mxu0 %v203_v12  ;;  %479 = vmatpush.msra.mxu1 %v203_v12 }
  0x41   : > { %483 = vmatpush.msra.mxu2 %v202_v13  ;;  %484 = vmatpush.msra.mxu3 %v202_v13 }
  0x42   : > { %229 = vmatpush.msra.mxu0 %v202_v13  ;;  %482 = vmatpush.msra.mxu1 %v202_v13 }
  0x43   : > { %486 = vmatpush.msra.mxu2 %v201_v14  ;;  %487 = vmatpush.msra.mxu3 %v201_v14 }
  0x44   : > { %230 = vmatpush.msra.mxu0 %v201_v14  ;;  %485 = vmatpush.msra.mxu1 %v201_v14 }
  0x45   : > { %489 = vmatpush.msra.mxu2 %v200_v15  ;;  %490 = vmatpush.msra.mxu3 %v200_v15 }
  0x46   : > { %280 = vmatmul.f32.vlgmr.msra.gmra.mxu2 %v184_v16  ;;  %304 = vmatmul.f32.vlgmr.msra.gmra.mxu3 %v192_v17 }
  0x47   : > { %231 = vmatpush.msra.mxu0 %v200_v15  ;;  %488 = vmatpush.msra.mxu1 %v200_v15 }
  0x48   : > { %232 = vmatmul.f32.vlgmr.msra.gmra.mxu0 %v168_v18  ;;  %256 = vmatmul.f32.vlgmr.msra.gmra.mxu1 %v176_v19 }
  0x4e   : > { %283 = vmatmul.f32.gmra.mxu2 %v185_v20  ;;  %307 = vmatmul.f32.gmra.mxu3 %v193_v21 }
  0x50   : > { %235 = vmatmul.f32.gmra.mxu0 %v169_v22  ;;  %259 = vmatmul.f32.gmra.mxu1 %v177_v23 }
  0x56   : > { %286 = vmatmul.f32.gmra.mxu2 %v186_v24  ;;  %310 = vmatmul.f32.gmra.mxu3 %v194_v25 }
  0x58   : > { %238 = vmatmul.f32.gmra.mxu0 %v170_v26  ;;  %262 = vmatmul.f32.gmra.mxu1 %v178_v27 }
  0x5e   : > { %289 = vmatmul.f32.gmra.mxu2 %v187_v28  ;;  %313 = vmatmul.f32.gmra.mxu3 %v195_v29 }
  0x60   : > { %241 = vmatmul.f32.gmra.mxu0 %v171_v30  ;;  %265 = vmatmul.f32.gmra.mxu1 %v179_v31 }
  0x66   : > { %292 = vmatmul.f32.gmra.mxu2 %v188_v32  ;;  %316 = vmatmul.f32.gmra.mxu3 %v196_v33 }
  0x68   : > { %244 = vmatmul.f32.gmra.mxu0 %v172_v34  ;;  %268 = vmatmul.f32.gmra.mxu1 %v180_v35 }
  0x6e   : > { %295 = vmatmul.f32.gmra.mxu2 %v189_v36  ;;  %319 = vmatmul.f32.gmra.mxu3 %v197_v37 }
  0x70   : > { %247 = vmatmul.f32.gmra.mxu0 %v173_v38  ;;  %271 = vmatmul.f32.gmra.mxu1 %v181_v39 }
  0x76   : > { %298 = vmatmul.f32.gmra.mxu2 %v190_v40  ;;  %322 = vmatmul.f32.gmra.mxu3 %v198_v41 }
  0x78   : > { %250 = vmatmul.f32.gmra.mxu0 %v174_v42  ;;  %274 = vmatmul.f32.gmra.mxu1 %v182_v43 }
  0x7e   : > { %301 = vmatmul.f32.gmra.mxu2 %v191_v44  ;;  %325 = vmatmul.f32.gmra.mxu3 %v199_v45 }
  0x80   : > { %253 = vmatmul.f32.gmra.mxu0 %v175_v46  ;;  %277 = vmatmul.f32.gmra.mxu1 %v183_v47 }
  0xc5   : > { %v233_v48 = vpop.f32.mrf.mxu0  ;;  %v257_v49 = vpop.f32.mrf.mxu1 }
  0xc6   : > { %330 = vst.msk [vmem:[%s775_s9] sm:$0xff] %vm329_vm0, %v233_v48 }
  0xc7   : > { %338 = vst.msk [vmem:[%s775_s9 + $0x40] sm:$0xff] %vm329_vm0, %v257_v49 }
  0xc9   : > { %v281_v50 = vpop.f32.mrf.mxu2  ;;  %v305_v51 = vpop.f32.mrf.mxu3 }
  0xca   : > { %346 = vst.msk [vmem:[%s775_s9 + $0x80] sm:$0xff] %vm329_vm0, %v281_v50 }
  0xcb   : > { %354 = vst.msk [vmem:[%s775_s9 + $0xc0] sm:$0xff] %vm329_vm0, %v305_v51 }
  0xcd   : > { %v236_v52 = vpop.f32.mrf.mxu0  ;;  %v260_v53 = vpop.f32.mrf.mxu1 }
  0xce   : > { %331 = vst.msk [vmem:[%s775_s9 + $0x8] sm:$0xff] %vm329_vm0, %v236_v52 }
  0xcf   : > { %339 = vst.msk [vmem:[%s775_s9 + $0x48] sm:$0xff] %vm329_vm0, %v260_v53 }
  0xd1   : > { %v284_v54 = vpop.f32.mrf.mxu2  ;;  %v308_v55 = vpop.f32.mrf.mxu3 }
  0xd2   : > { %347 = vst.msk [vmem:[%s775_s9 + $0x88] sm:$0xff] %vm329_vm0, %v284_v54 }
  0xd3   : > { %355 = vst.msk [vmem:[%s775_s9 + $0xc8] sm:$0xff] %vm329_vm0, %v308_v55 }
  0xd5   : > { %v239_v56 = vpop.f32.mrf.mxu0  ;;  %v263_v57 = vpop.f32.mrf.mxu1 }
  0xd6   : > { %332 = vst.msk [vmem:[%s775_s9 + $0x10] sm:$0xff] %vm329_vm0, %v239_v56 }
  0xd7   : > { %340 = vst.msk [vmem:[%s775_s9 + $0x50] sm:$0xff] %vm329_vm0, %v263_v57 }
  0xd9   : > { %v287_v58 = vpop.f32.mrf.mxu2  ;;  %v311_v59 = vpop.f32.mrf.mxu3 }
  0xda   : > { %348 = vst.msk [vmem:[%s775_s9 + $0x90] sm:$0xff] %vm329_vm0, %v287_v58 }
  0xdb   : > { %356 = vst.msk [vmem:[%s775_s9 + $0xd0] sm:$0xff] %vm329_vm0, %v311_v59 }
  0xdd   : > { %v242_v60 = vpop.f32.mrf.mxu0  ;;  %v266_v61 = vpop.f32.mrf.mxu1 }
  0xde   : > { %333 = vst.msk [vmem:[%s775_s9 + $0x18] sm:$0xff] %vm329_vm0, %v242_v60 }
  0xdf   : > { %341 = vst.msk [vmem:[%s775_s9 + $0x58] sm:$0xff] %vm329_vm0, %v266_v61 }
  0xe1   : > { %v290_v62 = vpop.f32.mrf.mxu2  ;;  %v314_v63 = vpop.f32.mrf.mxu3 }
  0xe2   : > { %349 = vst.msk [vmem:[%s775_s9 + $0x98] sm:$0xff] %vm329_vm0, %v290_v62 }
  0xe3   : > { %357 = vst.msk [vmem:[%s775_s9 + $0xd8] sm:$0xff] %vm329_vm0, %v314_v63 }
  0xe5   : > { %v245_v0 = vpop.f32.mrf.mxu0  ;;  %v269_v1 = vpop.f32.mrf.mxu1 }
  0xe6   : > { %334 = vst.msk [vmem:[%s775_s9 + $0x20] sm:$0xff] %vm329_vm0, %v245_v0 }
  0xe7   : > { %342 = vst.msk [vmem:[%s775_s9 + $0x60] sm:$0xff] %vm329_vm0, %v269_v1 }
  0xe9   : > { %v293_v2 = vpop.f32.mrf.mxu2  ;;  %v317_v3 = vpop.f32.mrf.mxu3 }
  0xea   : > { %350 = vst.msk [vmem:[%s775_s9 + $0xa0] sm:$0xff] %vm329_vm0, %v293_v2 }
  0xeb   : > { %358 = vst.msk [vmem:[%s775_s9 + $0xe0] sm:$0xff] %vm329_vm0, %v317_v3 }
  0xed   : > { %v248_v4 = vpop.f32.mrf.mxu0  ;;  %v272_v5 = vpop.f32.mrf.mxu1 }
  0xee   : > { %335 = vst.msk [vmem:[%s775_s9 + $0x28] sm:$0xff] %vm329_vm0, %v248_v4 }
  0xef   : > { %343 = vst.msk [vmem:[%s775_s9 + $0x68] sm:$0xff] %vm329_vm0, %v272_v5 }
  0xf1   : > { %v296_v6 = vpop.f32.mrf.mxu2  ;;  %v320_v7 = vpop.f32.mrf.mxu3 }
  0xf2   : > { %351 = vst.msk [vmem:[%s775_s9 + $0xa8] sm:$0xff] %vm329_vm0, %v296_v6 }
  0xf3   : > { %359 = vst.msk [vmem:[%s775_s9 + $0xe8] sm:$0xff] %vm329_vm0, %v320_v7 }
  0xf5   : > { %v251_v8 = vpop.f32.mrf.mxu0  ;;  %v275_v9 = vpop.f32.mrf.mxu1 }
  0xf6   : > { %336 = vst.msk [vmem:[%s775_s9 + $0x30] sm:$0xff] %vm329_vm0, %v251_v8 }
  0xf7   : > { %344 = vst.msk [vmem:[%s775_s9 + $0x70] sm:$0xff] %vm329_vm0, %v275_v9 }
  0xf9   : > { %v299_v10 = vpop.f32.mrf.mxu2  ;;  %v323_v11 = vpop.f32.mrf.mxu3 }
  0xfa   : > { %352 = vst.msk [vmem:[%s775_s9 + $0xb0] sm:$0xff] %vm329_vm0, %v299_v10 }
  0xfb   : > { %360 = vst.msk [vmem:[%s775_s9 + $0xf0] sm:$0xff] %vm329_vm0, %v323_v11 }
  0xfd   : > { %v254_v12 = vpop.f32.mrf.mxu0  ;;  %v278_v13 = vpop.f32.mrf.mxu1 }
  0xfe   : > { %337 = vst.msk [vmem:[%s775_s9 + $0x38] sm:$0xff] %vm329_vm0, %v254_v12 }
  0xff   : > { %345 = vst.msk [vmem:[%s775_s9 + $0x78] sm:$0xff] %vm329_vm0, %v278_v13 }
 0x101   : > { %v302_v14 = vpop.f32.mrf.mxu2  ;;  %v326_v15 = vpop.f32.mrf.mxu3 }
 0x102   : > { %353 = vst.msk [vmem:[%s775_s9 + $0xb8] sm:$0xff] %vm329_vm0, %v302_v14 }
 0x103   : > { %361 = vst.msk [vmem:[%s775_s9 + $0xf8] sm:$0xff] %vm329_vm0, %v326_v15 }
 0x104 PF: > { %p12_p7 = scmp.ge.s32.totalorder %s635_s14, 4   ;;  %s860_s9 = smov %s588_s10 }
 0x105   : > { %s861_s10 = smov %s592_s11  ;;  %s862_s11 = smov %s645_s17 }
 0x106   : > { %s863_s12 = smov %s635_s14  ;;  %14 = sbr.rel (!%p12_p7) target bundleno = 3 (0x3), region = 68 }
 0x10b   :  { %384 = vsyncpa [#allocation3], 1 }
 0x10c   :  { %386 = vsyncpa [#allocation3 + $0x1], 1 }

</bundles_post_ra>
